<compile_context>
chip_gen: v6e
topology: v6e:2x2x1
jax: 0.10.0
libtpu: 0.0.40
codegen_flags: <defaults>
</compile_context>

<pallas_src>
import jax
import jax.numpy as jnp
from jax.experimental import pallas as pl
from jax.experimental.pallas import tpu as pltpu


# ----------------------------------------------------------------------------
# Kernel 1: attention scores  s[r] = tanh(X @ W + b) @ u   for each row r of X
# Grid: (n, k) over W tiles, k (the contraction axis of X@W) innermost.
# ----------------------------------------------------------------------------
def _scores_kernel(x_ref, w_ref, b_ref, u_ref, s_ref, acc_ref):
    n = pl.program_id(0)
    k = pl.program_id(1)

    # Score accumulator lives in the resident output block: zero once.
    @pl.when((n == 0) & (k == 0))
    def _():
        s_ref[...] = jnp.zeros_like(s_ref)

    # Fresh (2B, TN) partial-matmul accumulator for every N tile.
    @pl.when(k == 0)
    def _():
        acc_ref[...] = jnp.zeros_like(acc_ref)

    # bf16 x bf16 -> f32 accumulate on the MXU.
    acc_ref[...] += jnp.dot(
        x_ref[...], w_ref[...], preferred_element_type=jnp.float32
    )

    # On the last K step: bias + tanh (f32), then reduce against u over lanes
    # and accumulate this N-tile's contribution to the scores.
    @pl.when(k == pl.num_programs(1) - 1)
    def _():
        h = jnp.tanh(acc_ref[...] + b_ref[...])                        # (2B, TN)
        s_ref[...] += jnp.sum(h * u_ref[...], axis=-1, keepdims=True)  # (2B, 1)


# ----------------------------------------------------------------------------
# Kernel 2: per-pair 2-way softmax + weighted fusion, tiled (parallel) over D.
# ----------------------------------------------------------------------------
def _fuse_kernel(s_rv_ref, s_sv_ref, rv_ref, sv_ref, o_ref):
    s_rv = s_rv_ref[...]                            # (B, 1)
    s_sv = s_sv_ref[...]                            # (B, 1)
    m = jnp.maximum(s_rv, s_sv)
    e_rv = jnp.exp(s_rv - m)
    e_sv = jnp.exp(s_sv - m)
    inv = pl.reciprocal(e_rv + e_sv, approx=True)   # softmax denom on the EUP
    o_ref[...] = (e_rv * inv) * rv_ref[...] + (e_sv * inv) * sv_ref[...]


def _pick_tile(dim, candidates=(256, 128)):
    # Prefer 256/128-aligned tiles (full MXU passes); fall back to the full
    # dimension for small / odd sizes (block == full extent is always legal).
    for c in candidates:
        if dim % c == 0:
            return c
    return dim


def attention_forward(input_rv, input_sv, W, b, u, *, tk=None, tn=None, td=None):
    """Forward pass of the Attention fusion module.

    input_rv / input_sv: (D,) or (B, D) float32 (batched pairs recommended)
    W: (D, D) float32 (streamed as bf16), b: (D,) float32, u: (D, 1) float32
    Returns: same leading shape as the inputs, feature dim D, float32.
    """
    squeeze = input_rv.ndim == 1
    rv = jnp.atleast_2d(input_rv).astype(jnp.float32)   # (B, D)
    sv = jnp.atleast_2d(input_sv).astype(jnp.float32)   # (B, D)
    B, D = rv.shape
    R = 2 * B

    tk = tk or _pick_tile(D)
    tn = tn or _pick_tile(D)
    td = td or _pick_tile(D)
    assert D % tk == 0 and D % tn == 0 and D % td == 0, "tiles must divide D"

    # bf16 operands for the MXU stream (halves HBM bytes on the dominant W
    # traffic); bias / u / all accumulation stay f32.
    w_bf16 = W.astype(jnp.bfloat16)                                   # (D, D)
    x_bf16 = jnp.concatenate([rv, sv], axis=0).astype(jnp.bfloat16)   # (2B, D)
    b2d = b.reshape(1, D).astype(jnp.float32)
    u2d = u.reshape(1, D).astype(jnp.float32)                         # u^T

    # --- pass 1: scores ------------------------------------------------------
    grid = (D // tn, D // tk)   # n outer, k (reduction) innermost
    scores = pl.pallas_call(
        _scores_kernel,
        out_shape=jax.ShapeDtypeStruct((R, 1), jnp.float32),
        grid_spec=pltpu.PrefetchScalarGridSpec(
            num_scalar_prefetch=0,
            grid=grid,
            in_specs=[
                pl.BlockSpec((R, tk), lambda n, k: (0, k)),    # X (rows resident)
                pl.BlockSpec((tk, tn), lambda n, k: (k, n)),   # W stream
                pl.BlockSpec((1, tn), lambda n, k: (0, n)),    # b
                pl.BlockSpec((1, tn), lambda n, k: (0, n)),    # u^T
            ],
            # Same output block for every grid step -> resident accumulator.
            out_specs=pl.BlockSpec((R, 1), lambda n, k: (0, 0)),
            scratch_shapes=[pltpu.VMEM((R, tn), jnp.float32)],
        ),
        compiler_params=pltpu.CompilerParams(
            # Both axes feed accumulators (scores over n, matmul over k).
            dimension_semantics=("arbitrary", "arbitrary")),
        cost_estimate=pl.CostEstimate(
            flops=2 * R * D * D + 4 * R * D,
            transcendentals=R * D,
            bytes_accessed=2 * D * D + 2 * R * D + 8 * D + 4 * R),
    )(x_bf16, w_bf16, b2d, u2d)

    s_rv = scores[:B]     # (B, 1)
    s_sv = scores[B:]     # (B, 1)

    # --- pass 2: softmax over each pair + weighted fusion --------------------
    out = pl.pallas_call(
        _fuse_kernel,
        out_shape=jax.ShapeDtypeStruct((B, D), jnp.float32),
        grid=(D // td,),
        in_specs=[
            pl.BlockSpec((B, 1), lambda d: (0, 0)),    # rv scores (resident)
            pl.BlockSpec((B, 1), lambda d: (0, 0)),    # sv scores (resident)
            pl.BlockSpec((B, td), lambda d: (0, d)),   # rv tile
            pl.BlockSpec((B, td), lambda d: (0, d)),   # sv tile
        ],
        out_specs=pl.BlockSpec((B, td), lambda d: (0, d)),
        compiler_params=pltpu.CompilerParams(
            dimension_semantics=("parallel",)),        # shards over TCs (v7x)
        cost_estimate=pl.CostEstimate(
            flops=7 * B * D,
            transcendentals=2 * B,
            bytes_accessed=12 * B * D),
    )(s_rv, s_sv, rv, sv)

    return out[0] if squeeze else out


def _reference(rv, sv, W, b, u):
    """Pure-JAX reference mirroring the kernel's bf16-operand precision choice."""
    Wq = W.astype(jnp.bfloat16).astype(jnp.float32)
    rvq = rv.astype(jnp.bfloat16).astype(jnp.float32)
    svq = sv.astype(jnp.bfloat16).astype(jnp.float32)
    h_rv = jnp.tanh(rvq @ Wq + b)                                      # (B, D)
    h_sv = jnp.tanh(svq @ Wq + b)
    s_rv = jnp.sum(h_rv * u[:, 0][None, :], axis=-1, keepdims=True)    # (B, 1)
    s_sv = jnp.sum(h_sv * u[:, 0][None, :], axis=-1, keepdims=True)
    a = jax.nn.softmax(jnp.concatenate([s_rv, s_sv], axis=1), axis=1)  # (B, 2)
    return rv * a[:, 0:1] + sv * a[:, 1:2]


if __name__ == "__main__":
    D = 256   # input_size (small but exercises a 2x2 W-tile grid)
    B = 4     # batched (rv, sv) pairs to amortize the W stream

    key = jax.random.PRNGKey(0)
    k_rv, k_sv, k_W, k_u = jax.random.split(key, 4)

    # Deterministic parameter init mirroring reset_parameters():
    #   xavier_uniform_(W): bound = sqrt(6 / (D + D)); zeros_(b)
    #   xavier_uniform_(u): u is (D, 1) -> bound = sqrt(6 / (D + 1))
    bound_W = (6.0 / (D + D)) ** 0.5
    bound_u = (6.0 / (D + 1)) ** 0.5
    W = jax.random.uniform(k_W, (D, D), jnp.float32, -bound_W, bound_W)
    b = jnp.zeros((D,), jnp.float32)
    u = jax.random.uniform(k_u, (D, 1), jnp.float32, -bound_u, bound_u)

    rv = jax.random.normal(k_rv, (B, D), jnp.float32)
    sv = jax.random.normal(k_sv, (B, D), jnp.float32)

    ref = _reference(rv, sv, W, b, u)

    # Batched, tiled path (exercises the (n, k) grid: 2x2 W tiles of 128x128).
    out = attention_forward(rv, sv, W, b, u, tk=128, tn=128, td=128)
    out = jax.block_until_ready(out)
    assert out.shape == (B, D)
    assert jnp.allclose(out, ref, atol=1e-3, rtol=1e-2), "batched mismatch vs reference"

    # Original single-pair (D,) API path (full-extent blocks, grid (1, 1)).
    out1 = attention_forward(rv[0], sv[0], W, b, u)
    out1 = jax.block_until_ready(out1)
    assert out1.shape == (D,)
    assert jnp.allclose(out1, ref[0], atol=1e-3, rtol=1e-2), "single-pair mismatch"

    print("KERNEL_OK")
</pallas_src>

<mosaic_0001>
module attributes {stable_mosaic.version = 11 : i64} {
  func.func @_scores_kernel(%arg0: i32, %arg1: i32, %arg2: memref<8x128xbf16, #tpu.memory_space<vmem>>, %arg3: memref<128x128xbf16, #tpu.memory_space<vmem>>, %arg4: memref<1x128xf32, #tpu.memory_space<vmem>>, %arg5: memref<1x128xf32, #tpu.memory_space<vmem>>, %arg6: memref<8x1xf32, #tpu.memory_space<vmem>>, %arg7: memref<8x128xf32, #tpu.memory_space<vmem>>) attributes {dimension_semantics = [#tpu.dimension_semantics<arbitrary>, #tpu.dimension_semantics<arbitrary>], iteration_bounds = array<i64: 2, 2>, scalar_prefetch = 0 : i64, scratch_operands = 1 : i64, tpu.core_type = #tpu.core_type<tc>, window_params = [{transform_indices = @transform_0, window_bounds = array<i64: 8, 128>}, {transform_indices = @transform_1, window_bounds = array<i64: 128, 128>}, {transform_indices = @transform_2, window_bounds = array<i64: 1, 128>}, {transform_indices = @transform_3, window_bounds = array<i64: 1, 128>}, {pipeline_mode = #tpu.pipeline_mode<synchronous>, transform_indices = @transform_4, window_bounds = array<i64: 8, 1>}]} {
    %c0_i32 = arith.constant 0 : i32
    %0 = arith.cmpi eq, %arg0, %c0_i32 : i32
    %c0_i32_0 = arith.constant 0 : i32
    %1 = arith.cmpi eq, %arg1, %c0_i32_0 : i32
    %2 = arith.andi %0, %1 : i1
    %3 = arith.extui %2 : i1 to i32
    %c0_i32_1 = arith.constant 0 : i32
    %4 = arith.cmpi ne, %3, %c0_i32_1 : i32
    scf.if %4 {
      %cst_12 = arith.constant 0.000000e+00 : f32
      %17 = vector.broadcast %cst_12 : f32 to vector<8x1xf32>
      %c0_13 = arith.constant 0 : index
      %c0_14 = arith.constant 0 : index
      %18 = vector.load %arg6[%c0_13, %c0_14] : memref<8x1xf32, #tpu.memory_space<vmem>>, vector<8x1xf32>
      tpu.vector_store %arg6[%c0_13, %c0_14], %17 {strides = array<i32>} : memref<8x1xf32, #tpu.memory_space<vmem>>, vector<8x1xf32>,
    } else {
    }
    %c0_i32_2 = arith.constant 0 : i32
    %5 = arith.cmpi eq, %arg1, %c0_i32_2 : i32
    %6 = arith.extui %5 : i1 to i32
    %c0_i32_3 = arith.constant 0 : i32
    %7 = arith.cmpi ne, %6, %c0_i32_3 : i32
    scf.if %7 {
      %cst_12 = arith.constant 0.000000e+00 : f32
      %17 = vector.broadcast %cst_12 : f32 to vector<8x128xf32>
      %c0_13 = arith.constant 0 : index
      %c0_14 = arith.constant 0 : index
      %18 = vector.load %arg7[%c0_13, %c0_14] : memref<8x128xf32, #tpu.memory_space<vmem>>, vector<8x128xf32>
      tpu.vector_store %arg7[%c0_13, %c0_14], %17 {strides = array<i32>} : memref<8x128xf32, #tpu.memory_space<vmem>>, vector<8x128xf32>,
    } else {
    }
    %c0 = arith.constant 0 : index
    %c0_4 = arith.constant 0 : index
    %8 = vector.load %arg7[%c0, %c0_4] : memref<8x128xf32, #tpu.memory_space<vmem>>, vector<8x128xf32>
    %c0_5 = arith.constant 0 : index
    %c0_6 = arith.constant 0 : index
    %9 = vector.load %arg2[%c0_5, %c0_6] : memref<8x128xbf16, #tpu.memory_space<vmem>>, vector<8x128xbf16>
    %c0_7 = arith.constant 0 : index
    %c0_8 = arith.constant 0 : index
    %10 = vector.load %arg3[%c0_7, %c0_8] : memref<128x128xbf16, #tpu.memory_space<vmem>>, vector<128x128xbf16>
    %cst = arith.constant dense<0.000000e+00> : vector<8x128xf32>
    %11 = tpu.matmul %9, %10, %cst {dimension_numbers = #tpu.dot_dimension_numbers<[1], [0], [0], [1], [0, 0, 1, 1], [], []>} : vector<8x128xbf16>, vector<128x128xbf16>, vector<8x128xf32> -> vector<8x128xf32>
    %12 = arith.addf %8, %11 : vector<8x128xf32>
    %c0_9 = arith.constant 0 : index
    %c0_10 = arith.constant 0 : index
    %13 = vector.load %arg7[%c0_9, %c0_10] : memref<8x128xf32, #tpu.memory_space<vmem>>, vector<8x128xf32>
    tpu.vector_store %arg7[%c0_9, %c0_10], %12 {strides = array<i32>} : memref<8x128xf32, #tpu.memory_space<vmem>>, vector<8x128xf32>,
    %c1_i32 = arith.constant 1 : i32
    %14 = arith.cmpi eq, %arg1, %c1_i32 : i32
    %15 = arith.extui %14 : i1 to i32
    %c0_i32_11 = arith.constant 0 : i32
    %16 = arith.cmpi ne, %15, %c0_i32_11 : i32
    scf.if %16 {
      %c0_12 = arith.constant 0 : index
      %c0_13 = arith.constant 0 : index
      %17 = vector.load %arg7[%c0_12, %c0_13] : memref<8x128xf32, #tpu.memory_space<vmem>>, vector<8x128xf32>
      %c0_14 = arith.constant 0 : index
      %c0_15 = arith.constant 0 : index
      %18 = vector.load %arg4[%c0_14, %c0_15] : memref<1x128xf32, #tpu.memory_space<vmem>>, vector<1x128xf32>
      %19 = vector.broadcast %18 : vector<1x128xf32> to vector<8x128xf32>
      %20 = arith.addf %17, %19 : vector<8x128xf32>
      %21 = math.tanh %20 : vector<8x128xf32>
      %c0_16 = arith.constant 0 : index
      %c0_17 = arith.constant 0 : index
      %22 = vector.load %arg6[%c0_16, %c0_17] : memref<8x1xf32, #tpu.memory_space<vmem>>, vector<8x1xf32>
      %c0_18 = arith.constant 0 : index
      %c0_19 = arith.constant 0 : index
      %23 = vector.load %arg5[%c0_18, %c0_19] : memref<1x128xf32, #tpu.memory_space<vmem>>, vector<1x128xf32>
      %24 = vector.broadcast %23 : vector<1x128xf32> to vector<8x128xf32>
      %25 = arith.mulf %21, %24 : vector<8x128xf32>
      %cst_20 = arith.constant dense<0.000000e+00> : vector<8xf32>
      %26 = vector.multi_reduction <add>, %25, %cst_20 [1] : vector<8x128xf32> to vector<8xf32>
      %27 = vector.shape_cast %26 : vector<8xf32> to vector<8x1xf32>
      %28 = arith.addf %22, %27 : vector<8x1xf32>
      %c0_21 = arith.constant 0 : index
      %c0_22 = arith.constant 0 : index
      %29 = vector.load %arg6[%c0_21, %c0_22] : memref<8x1xf32, #tpu.memory_space<vmem>>, vector<8x1xf32>
      tpu.vector_store %arg6[%c0_21, %c0_22], %28 {strides = array<i32>} : memref<8x1xf32, #tpu.memory_space<vmem>>, vector<8x1xf32>,
    } else {
    }
    return
  }
  func.func @transform_0(%arg0: i32, %arg1: i32) -> (i32, i32) {
    %c0_i32 = arith.constant 0 : i32
    %c0_i32_0 = arith.constant 0 : i32
    return %c0_i32, %arg1 : i32, i32
  }
  func.func @transform_1(%arg0: i32, %arg1: i32) -> (i32, i32) {
    %c0_i32 = arith.constant 0 : i32
    return %arg1, %arg0 : i32, i32
  }
  func.func @transform_2(%arg0: i32, %arg1: i32) -> (i32, i32) {
    %c0_i32 = arith.constant 0 : i32
    %c0_i32_0 = arith.constant 0 : i32
    return %c0_i32, %arg0 : i32, i32
  }
  func.func @transform_3(%arg0: i32, %arg1: i32) -> (i32, i32) {
    %c0_i32 = arith.constant 0 : i32
    %c0_i32_0 = arith.constant 0 : i32
    return %c0_i32, %arg0 : i32, i32
  }
  func.func @transform_4(%arg0: i32, %arg1: i32) -> (i32, i32) {
    %c0_i32 = arith.constant 0 : i32
    %c0_i32_0 = arith.constant 0 : i32
    %c0_i32_1 = arith.constant 0 : i32
    return %c0_i32, %c0_i32_0 : i32, i32
  }
}

</mosaic_0001>

<bundles_post_ra>
// kernel: tpu_custom_call.1
= control target key start
LH: loop header
LB: loop body
LE: loop exit
PB: predicated region body
PF: predicated region fallthrough
CT: control target
= control target key end

     0   :  { %s1115_s0 = inlined_call_operand.hbm [shape: bf16[8,256], index: 0, kind: input, shape index: {}]   ;;  %s1116_s1 = inlined_call_operand.hbm [shape: bf16[256,256], index: 1, kind: input, shape index: {}]   ;;  %s1117_s2 = inlined_call_operand.vmem [shape: f32[1,256], index: 2, kind: input, shape index: {}]   ;;  %s1118_s3 = inlined_call_operand.vmem [shape: f32[1,256], index: 3, kind: input, shape index: {}]   ;;  %s1119_s4 = inlined_call_operand.vmem [shape: f32[8,1], index: 4, kind: output, shape index: {}]  }
   0x1   :  { %1124 = sst [smem:[#allocation14_spill]] %s1115_s0 }
   0x2   :  { %9 = vsyncpa [#allocation4], 0 }
   0x3   :  { %11 = vsyncpa [#allocation4 + $0x1], 0 }
   0x4   :  { %12 = vsyncpa [#allocation6], 0 }
   0x5   :  { %14 = vsyncpa [#allocation6 + $0x1], 0  ;;  %s887_s15 = smov 0   ;;  %s889_s16 = smov 0  }
   0x6   :  { %s891_s17 = smov 0   ;;  %s893_s18 = smov 0  }
   0x7   :  { %s895_s19 = smov 0   ;;  %s897_s20 = smov 0  }
   0x8   :  { %s899_s21 = smov 0   ;;  %s901_s22 = smov 0  }
   0x9   :  { %s903_s23 = smov 0   ;;  %s905_s24 = smov 0  }
   0xa   :  { %s907_s25 = smov 0  }
   0xb LB: > { %1125 = sst [smem:[#allocation9_spill]] %s831_s20  ;;  %s528_s26 = sadd.s32 4294967295, %s851_s25   ;;  %s851_s25 = sphi %s907_s25, %s20_s25   ;;  %s847_s24 = sphi %s905_s24, %s1148_s24   ;;  %s843_s23 = sphi %s903_s23, %s1140_s23   ;;  %s839_s22 = sphi %s901_s22, %s1147_s22   ;;  %s835_s21 = sphi %s899_s21, %s1139_s21   ;;  %s831_s20 = sphi %s897_s20, %s1138_s20   ;;  %s827_s19 = sphi %s895_s19, %s1146_s19   ;;  %s823_s18 = sphi %s893_s18, %s1145_s18   ;;  %s819_s17 = sphi %s891_s17, %s1144_s17   ;;  %s815_s16 = sphi %s889_s16, %s1143_s16   ;;  %s811_s15 = sphi %s887_s15, %s1142_s15  }
   0xc   : > { %1126 = sst [smem:[#allocation10_spill]] %s843_s23  ;;  %s29_s27 = sadd.s32 1, %s843_s23 }
   0xd   : > { %p30_p0 = scmp.ge.s32.totalorder %s29_s27, 2  ;;  %s32_s28 = sadd.s32 1, %s847_s24 }
   0xe   : > { %s39_s29 = sadd.s32 1, %s831_s20  ;;  %p46_p1 = scmp.ne.s32.totalorder %s831_s20, %s827_s19 }
   0xf   : > { %s1150_s27 = smov (%p30_p0, %s29_s27), 0  ;;  %s1152_s28 = smov (!%p30_p0, %s32_s28), %s847_s24 }
  0x10   : > { %1127 = sst [smem:[#allocation11_spill]] %s1150_s27  ;;  %s36_s30 = ssub.s32 %s843_s23, %s1150_s27 }
  0x11   : > { %p47_p2 = scmp.eq.s32.totalorder %s851_s25, 0  ;;  %p34_p3 = scmp.ge.s32.totalorder %s1152_s28, 2 }
  0x12   : > { %p37_p4 = scmp.eq.s32.totalorder %s36_s30, 0  ;;  %p52_p6 = scmp.ne.s32.totalorder %s827_s19, %s823_s18 }
  0x13   : > { %p954_p5 = por %p47_p2, %p46_p1  ;;  %s1154_s28 = smov (%p34_p3, %s1152_s28), 0 }
  0x14   : > { %1129 = sst [smem:[#allocation12_spill]] %s1154_s28  ;;  %p53_p7 = scmp.eq.s32.totalorder %s528_s26, 0 }
  0x15   : > { %s962_s6 = scalar_select %p37_p4, %s831_s20, %s39_s29  }
  0x16   : > { %s63_s7 = ssub.s32 %s847_s24, %s1154_s28  ;;  %s67_s9 = sadd.s32 1, %s819_s17 }
  0x17   : > { %1130 = sst [smem:[#allocation13_spill]] %s962_s6  ;;  %s64_s8 = sor.u32 %s63_s7, %s36_s30 }
  0x18   : > { %p967_p8 = por %p53_p7, %p52_p6  ;;  %p65_p9 = scmp.eq.s32.totalorder %s64_s8, 0 }
  0x19   : > { %p74_p10 = scmp.ne.s32.totalorder %s819_s17, %s815_s16  ;;  %p80_p11 = scmp.ne.s32.totalorder %s815_s16, %s811_s15 }
  0x1a   : > { %s976_s11 = scalar_select %p65_p9, %s819_s17, %s67_s9  }
  0x1b   : > { %p76_p12 = por %p74_p10, %p47_p2  ;;  %p980_p13 = por %p80_p11, %p53_p7 }
  0x1c   : > { %p595_p0 = scmp.lt.s32.totalorder %s851_s25, 4  ;;  %s177_s13 = sand.u32 1, %s831_s20  }
  0x1d   : > { %s532_s14 = sshll.u32 %s843_s23, 6  ;;  %s531_s18 = sshll.u32 %s177_s13, 2 }
  0x1e   : > { %s1133_s0 = sld [smem:[#allocation14_spill]]  ;;  %s181_s7 = scalar_lea.vmem [#allocation3], %s531_s18 }
  0x1f   : > { %s188_s8 = sshll.u32 %s181_s7, 4  ;;  %p992_p1 = pnand %p595_p0, %p954_p5  ;;  %s189_s8 = int_to_ptr.vmem [resolvable:$true] %s188_s8 }
  0x20   : > { %s554_s9 = sshll.u32 %s843_s23, 5  ;;  %p997_p2 = pnand %p595_p0, %p76_p12 }
  0x21   : > { %s178_s27 = scalar_lea.sflag [#allocation4], %s177_s13  ;;  %p703_p3 = pneg %p992_p1 }
  0x22   : > { %s714_s6 = scalar_lea.vmem %s189_s8, 64 }
  0x23   : > { %p715_p4 = scmp.ne.s32.totalorder %s189_s8, %s714_s6 }
  0x24   : > { %s186_s30 = scalar_lea.hbm %s1133_s0, %s532_s14  ;;  %s853_s14 = smov [#allocation3]  }
  0x25   : > { %p717_p6 = pnand %p715_p4, %p703_p3  ;;  %s719_s5 = sshll.u32 %s853_s14, 4  ;;  %s720_s5 = int_to_ptr.vmem [resolvable:$false] %s719_s5 }
  0x26   : > { %s721_s18 = scalar_lea.vmem %s720_s5, 128  ;;  %p722_p5 = scmp.lt.s32.totalorder %s189_s8, %s720_s5 }
  0x27   : > { %p718_p7 = pneg %p717_p6  ;;  %p723_p9 = scmp.lt.s32.totalorder %s721_s18, %s714_s6 }
  0x29   : > { %p724_p10 = por %p723_p9, %p722_p5 }
  0x2b   : > { %p725_p11 = pnand %p724_p10, %p718_p7 }
  0x2d   : > { %728 = shalt.err (!%p725_p11)
}
  0x2e   : > { %591 = dma.hbm_to_vmem [thread:$0]  (!%p992_p1), %s186_s30, 64, %s189_s8, %s178_s27  }
  0x2f   : > { %p537_p12 = scmp.ge.s32.totalorder %s851_s25, 1  ;;  %p228_p0 = scmp.lt.s32.totalorder %s851_s25, 5 }
  0x30   : > { %s195_s13 = sand.u32 1, %s819_s17   ;;  %s205_s6 = sadd.s32 %s847_s24, %s554_s9 }
  0x31   : > { %s533_s26 = sshll.u32 %s195_s13, 6  ;;  %p1008_p3 = pnand %p537_p12, %p228_p0 }
  0x32   : > { %s199_s7 = scalar_lea.vmem [#allocation5], %s533_s26  ;;  %s536_s5 = sshll.u32 %s205_s6, 6 }
  0x33   : > { %s208_s14 = sshll.u32 %s199_s7, 4  ;;  %s207_s0 = scalar_lea.hbm %s1116_s1, %s536_s5  ;;  %s209_s14 = int_to_ptr.vmem [resolvable:$true] %s208_s14 }
  0x34   : > { %s196_s23 = scalar_lea.sflag [#allocation6], %s195_s13  ;;  %p731_p1 = pneg %p997_p2 }
  0x35   : > { %s742_s27 = scalar_lea.vmem %s209_s14, 1024  ;;  %s854_s30 = smov [#allocation5]  }
  0x36   : > { %p743_p4 = scmp.ne.s32.totalorder %s209_s14, %s742_s27  ;;  %s747_s8 = sshll.u32 %s854_s30, 4  ;;  %s748_s8 = int_to_ptr.vmem [resolvable:$false] %s747_s8 }
  0x37   : > { %s749_s20 = scalar_lea.vmem %s748_s8, 2048  ;;  %p750_p5 = scmp.lt.s32.totalorder %s209_s14, %s748_s8 }
  0x38   : > { %p745_p6 = pnand %p743_p4, %p731_p1  ;;  %p751_p9 = scmp.lt.s32.totalorder %s749_s20, %s742_s27 }
  0x3a   : > { %p746_p7 = pneg %p745_p6  ;;  %p752_p10 = por %p751_p9, %p750_p5 }
  0x3c   : > { %p753_p11 = pnand %p752_p10, %p746_p7 }
  0x3e   : > { %756 = shalt.err (!%p753_p11)
}
  0x3f   : > { %s855_s9 = smov 128   ;;  %s856_s26 = smov 64  }
  0x40   : > { %s857_s6 = smov 4   ;;  %232 = sbr.rel (%p1008_p3) target bundleno = 490 (0x1ea), region = 36 }
  0x41   : > { %594 = dma.hbm_to_vmem [thread:$0]  (!%p997_p2), %s207_s0, 1024, %s209_s14, %s196_s23, %s855_s9, %s856_s26, %s857_s6  }
  0x42   : > { %s234_s13 = sand.u32 (!%p1008_p3), 1, %s827_s19  }
  0x43   : > { %s1023_s7 = sshll.u32 (!%p1008_p3), %s234_s13, 2  ;;  %s235_s5 = scalar_lea.sflag (!%p1008_p3), [#allocation4], %s234_s13 }
  0x44   : > { %s238_s20 = scalar_lea.vmem (!%p1008_p3), [#allocation3], %s1023_s7 }
  0x45   : > { %802 = dma.done.wait (%p967_p8), %s235_s5, 64  }
  0x46   : > { %804 = vsyncadd (%p967_p8), %s235_s5, 4294967232  ;;  %s243_s28 = sand.u32 1, %s815_s16  }
  0x47   : > { %s539_s0 = sshll.u32 %s243_s28, 6  ;;  %s244_s23 = scalar_lea.sflag [#allocation6], %s243_s28 }
  0x48   : > { %s1031_s29 = scalar_lea.vmem [#allocation5], %s539_s0 }
  0x49   : > { %806 = dma.done.wait (%p980_p13), %s244_s23, 1024  }
  0x4a   : > { %808 = vsyncadd (%p980_p13), %s244_s23, 4294966272  ;;  %p279_p2 = scmp.lt.s32.totalorder %s839_s22, 1  ;;  %p286_p12 = scmp.eq.s32.totalorder %s839_s22, 0 }
  0x4b   : > { %p287_p0 = scmp.eq.s32.totalorder %s835_s21, 0 }
  0x4c   : > { %s1156_s22 = smov (!%p279_p2, %s839_s22), 1 }
  0x4d   : > { %p288_p8 = pnand %p287_p0, %p286_p12  ;;  %s281_s15 = scalar_lea.vmem %s1117_s2, %s1156_s22 }
  0x4e   : > { %s284_s12 = scalar_lea.vmem %s1118_s3, %s1156_s22 }
  0x4f   : > { %291 = sbr.rel (%p288_p8) target bundleno = 86 (0x56), region = 48 }
  0x54   : > { %vm292_vm0 = vcmask 7168   ;;  %v858_v0 = vmov 0.0  }
  0x55   : > { %293 = vst.msk [vmem:[%s1119_s4] sm:$0xff] %vm292_vm0, %v858_v0 }
  0x56 PF: > { %p540_p13 = scmp.ne.s32.totalorder %s835_s21, 0 }
  0x58   : > { %296 = sbr.rel (%p540_p13) target bundleno = 95 (0x5f), region = 52 }
  0x5d   : > { %v859_v1 = vmov 0.0  }
  0x5e   : > { %297 = vst [vmem:[#allocation2] sm:$0xff] %v859_v1 }
  0x5f PF: > { %v691_v2 = vld [vmem:[%s1031_s29 + $0x38] sm:$0xff]   ;;  %v860_v3 = vmov 0.0   ;;  %v692_v4 = vld [vmem:[%s1031_s29 + $0x30] sm:$0xff]   ;;  %vm861_vm1 = vmmov 0   ;;  %v693_v5 = vld [vmem:[%s1031_s29 + $0x28] sm:$0xff]   ;;  %p549_p3 = scmp.ne.s32.totalorder %s835_s21, 1 }
  0x60   : > { %564 = vmatprep.subr.bf16.mxu0 %v860_v3  ;;  %580 = vmatprep.mubr.msk.bf16.mxu0 %vm861_vm1, %v860_v3  ;;  %v694_v6 = vld [vmem:[%s1031_s29 + $0x20] sm:$0xff]   ;;  %v695_v7 = vld [vmem:[%s1031_s29 + $0x18] sm:$0xff]   ;;  %v696_v8 = vld [vmem:[%s1031_s29 + $0x10] sm:$0xff]  }
  0x61   : > { %565 = vmatpush3.bf16.msra.mxu0 %v691_v2  ;;  %v697_v9 = vld [vmem:[%s1031_s29 + $0x8] sm:$0xff]   ;;  %v698_v10 = vld [vmem:[%s1031_s29] sm:$0xff]   ;;  %v299_v11 = vld [vmem:[%s238_s20] sm:$0xf] }
  0x62   : > { %566 = vmatprep.subr.bf16.mxu0 %v860_v3 }
  0x65   : > { %567 = vmatpush3.bf16.msra.mxu0 %v692_v4  ;;  %v298_v12 = vld [vmem:[#allocation2] sm:$0xff] }
  0x66   : > { %568 = vmatprep.subr.bf16.mxu0 %v860_v3 }
  0x69   : > { %569 = vmatpush3.bf16.msra.mxu0 %v693_v5 }
  0x6a   : > { %570 = vmatprep.subr.bf16.mxu0 %v860_v3 }
  0x6d   : > { %571 = vmatpush3.bf16.msra.mxu0 %v694_v6 }
  0x6e   : > { %572 = vmatprep.subr.bf16.mxu0 %v860_v3 }
  0x71   : > { %573 = vmatpush3.bf16.msra.mxu0 %v695_v7 }
  0x72   : > { %574 = vmatprep.subr.bf16.mxu0 %v860_v3 }
  0x75   : > { %575 = vmatpush3.bf16.msra.mxu0 %v696_v8 }
  0x76   : > { %576 = vmatprep.subr.bf16.mxu0 %v860_v3 }
  0x79   : > { %577 = vmatpush3.bf16.msra.mxu0 %v697_v9 }
  0x7a   : > { %578 = vmatprep.subr.bf16.mxu0 %v860_v3 }
  0x7d   : > { %579 = vmatpush3.bf16.msra.mxu0 %v698_v10 }
  0x80   : > { %581 = vmatmul.mubr.bf16.vlgmr.msra.gmra.mxu0 %v299_v11 }
 0x140   : > { %v398_v13 = vpop.f32.mrf.mxu0 }
 0x141   : > { %v404_v14 = vadd.f32 %v398_v13, %v298_v12 }
 0x142   : > { %v582_v15 = vpop.f32.mrf.mxu0  ;;  %409 = sbr.rel (%p549_p3) target bundleno = 490 (0x1ea), region = 56 }
 0x143   : > { %405 = vst [vmem:[#allocation2] sm:$0xff] %v404_v14 }
 0x144   : > { %v401_v16 = vpop.f32.mrf.mxu0 }
 0x146   : > { %v583_v17 = vpop.f32.mrf.mxu0 }
 0x147   : > { %v550_v19 = vld [vmem:[%s281_s15] ss:$0 sm:$0xff]  ;;  %vm432_vm2 = vcmask 7168  }
 0x148   : > { %v551_v21 = vld [vmem:[%s284_s12] ss:$0 sm:$0xff] }
 0x149   : > { %v420_v24 = vld [vmem:[%s1119_s4] sm:$0xff] }
 0x14a   : > { %v410_v18 = vld [vmem:[#allocation2] sm:$0xff] }
 0x14b   : > { %v418_v20 = vadd.f32 %v550_v19, %v410_v18 }
 0x14d   : > { %699 = vtanh.f32 %v418_v20 }
 0x15a   : > { %v700_v22 = vpop.eup %699 }
 0x15b   : > { %v428_v23 = vmul.f32 %v700_v22, %v551_v21 }
 0x15d   : > { %429 = vadd.xlane.f32.xlu0 %v428_v23 }
 0x1e6   : > { %v430_v25 = vpop.xlane.xlu0 %429 }
 0x1e7   : > { %v431_v26 = vadd.f32 %v430_v25, %v420_v24 }
 0x1e9   : > { %433 = vst.msk [vmem:[%s1119_s4] sm:$0xff] %vm432_vm2, %v431_v26 }
 0x1ea PF: > { %s20_s25 = sadd.s32 1, %s851_s25   ;;  %s1137_s22 = sld [smem:[#allocation9_spill]] }
 0x1eb   : > { %p17_p1 = scmp.ge.s32.totalorder %s20_s25, 6   ;;  %s1138_s20 = sld [smem:[#allocation13_spill]] }
 0x1ec   : > { %s1139_s21 = sld [smem:[#allocation10_spill]]  ;;  %s1142_s15 = smov %s815_s16 }
 0x1ed   : > { %s1140_s23 = sld [smem:[#allocation11_spill]]  ;;  %s1143_s16 = smov %s819_s17 }
 0x1ee   : > { %s1141_s28 = sld [smem:[#allocation12_spill]]  ;;  %s1144_s17 = smov %s976_s11 }
 0x1ef   : > { %s1145_s18 = smov %s827_s19 }
 0x1f0   : > { %s1146_s19 = smov %s1137_s22  ;;  %s1147_s22 = smov %s847_s24 }
 0x1f1   :  { %19 = sbr.rel (!%p17_p1) target bundleno = 11 (0xb), region = 103 }
 0x1f4   : > { %s1148_s24 = smov %s1141_s28 }
 0x1f6   :  { %445 = vsyncpa [#allocation4], 1 }
 0x1f7   :  { %447 = vsyncpa [#allocation4 + $0x1], 1 }
 0x1f8   :  { %448 = vsyncpa [#allocation6], 1 }
 0x1f9   :  { %450 = vsyncpa [#allocation6 + $0x1], 1 }

</bundles_post_ra>
